<compile_context>
chip_gen: v5e
topology: v5e:2x2
jax: 0.10.0
libtpu: 0.0.40
codegen_flags: <defaults>
</compile_context>

<pallas_src>
import math

import jax
import jax.numpy as jnp
from jax.experimental import pallas as pl
from jax.experimental.pallas import tpu as pltpu


# ---------------------------------------------------------------------------
# Buffer construction -- identical to the PyTorch module's __init__.
# ---------------------------------------------------------------------------
def make_positional_encoding(d_model, max_len=200, dtype=jnp.float32):
    position = jnp.arange(max_len, dtype=jnp.float32)[:, None]            # (max_len, 1)
    div_term = jnp.exp(
        jnp.arange(0, d_model, 2, dtype=jnp.float32)
        * (-math.log(10000.0) / d_model))                                 # (d_model//2,)
    pe = jnp.zeros((max_len, d_model), jnp.float32)
    pe = pe.at[:, 0::2].set(jnp.sin(position * div_term))
    pe = pe.at[:, 1::2].set(jnp.cos(position * div_term))
    # unsqueeze(0).transpose(0, 1)  ->  (max_len, 1, d_model)
    return pe[:, None, :].astype(dtype)


# ---------------------------------------------------------------------------
# Kernel: elementwise / broadcast add, one load + one store per tile.
#   3-D path: x (ts, B, D) + pe (ts, 1, D)   (broadcast over sublane/batch axis)
#   2-D path: x (ts, B*D)  + pe (ts, B*D)    (pe pre-tiled Bx along lanes)
# ---------------------------------------------------------------------------
def _add_kernel(x_ref, pe_ref, o_ref):
    o_ref[...] = (x_ref[...] + pe_ref[...]).astype(o_ref.dtype)


_TARGET_BLOCK_BYTES = 2 * 1024 * 1024          # ~2 MiB per x/out block (85%+ roofline)
_VMEM_LIMIT_BYTES = 48 * 1024 * 1024           # explicit; > v5e default, <= v7x physical

_COMPILER_PARAMS = pltpu.CompilerParams(
    dimension_semantics=("parallel",),         # lets v7x shard seq tiles over 2 TCs
    vmem_limit_bytes=_VMEM_LIMIT_BYTES,
)


def _choose_seq_tile(S, row_bytes, *, multiple):
    """Seq-tile size: ~_TARGET_BLOCK_BYTES per block, >=2 grid steps when S is
    non-trivial (v7x megacore), and a multiple of `multiple` when the seq axis
    sits on the sublane dimension (2-D path requires ts % 8 == 0 or ts == S)."""
    if S <= 2 * multiple:
        return S                                        # tiny: one block is fine
    ts = max(multiple, _TARGET_BLOCK_BYTES // max(1, row_bytes))
    ts = min(ts, (S + 1) // 2)                          # at least 2 grid steps
    ts = max(multiple, (ts // multiple) * multiple)     # sublane alignment
    return min(ts, S)


def positional_encoding_forward(x, pe):
    """x: (S, B, d_model); pe: (max_len, 1, d_model) buffer (max_len >= S)."""
    S, B, D = x.shape
    itemsize = jnp.dtype(x.dtype).itemsize
    row_bytes = B * D * itemsize

    lane_dense = (D % 128 == 0) and (B >= 8)            # vregs already well utilized

    if lane_dense:
        # 3-D path: pe stays (max_len, 1, D); its traffic is 1/B of x.
        ts = _choose_seq_tile(S, row_bytes, multiple=1)
        grid = (pl.cdiv(S, ts),)
        return pl.pallas_call(
            _add_kernel,
            out_shape=jax.ShapeDtypeStruct((S, B, D), x.dtype),
            grid=grid,
            in_specs=[
                pl.BlockSpec((ts, B, D), lambda i: (i, 0, 0)),   # x tile
                pl.BlockSpec((ts, 1, D), lambda i: (i, 0, 0)),   # pe tile (full buffer,
                                                                 #  no wrapper slice)
            ],
            out_specs=pl.BlockSpec((ts, B, D), lambda i: (i, 0, 0)),
            compiler_params=_COMPILER_PARAMS,
        )(x, pe)

    # 2-D lane-dense path for small B / d_model: flatten batch into lanes so the
    # output's last dim is B*D-dense (unmasked stores, full sublanes).  x reshape
    # is a free contiguous view; pe is tiled Bx along lanes once (cheap: this
    # path only triggers when B*D is small).
    x2d = x.reshape(S, B * D)
    pe2d = jnp.tile(pe[:S, 0, :], (1, B)).astype(x.dtype)        # (S, B*D)

    ts = _choose_seq_tile(S, row_bytes, multiple=8)
    grid = (pl.cdiv(S, ts),)
    out2d = pl.pallas_call(
        _add_kernel,
        out_shape=jax.ShapeDtypeStruct((S, B * D), x.dtype),
        grid=grid,
        in_specs=[
            pl.BlockSpec((ts, B * D), lambda i: (i, 0)),
            pl.BlockSpec((ts, B * D), lambda i: (i, 0)),
        ],
        out_specs=pl.BlockSpec((ts, B * D), lambda i: (i, 0)),
        compiler_params=_COMPILER_PARAMS,
    )(x2d, pe2d)
    return out2d.reshape(S, B, D)


# ---------------------------------------------------------------------------
# Demo / self-test
# ---------------------------------------------------------------------------
if __name__ == "__main__":
    d_model = 32      # must be even, as in the PyTorch module
    max_len = 200
    S, B = 8, 2       # small seq / batch

    key = jax.random.PRNGKey(0)
    x = jax.random.normal(key, (S, B, d_model), jnp.float32)
    pe = make_positional_encoding(d_model, max_len)

    out = jax.jit(positional_encoding_forward)(x, pe)
    jax.block_until_ready(out)

    # Reference: exactly what the PyTorch forward computes.
    ref = x + pe[:S]
    assert out.shape == (S, B, d_model), out.shape
    assert jnp.allclose(out, ref, atol=1e-6), float(jnp.max(jnp.abs(out - ref)))
    print("KERNEL_OK")
</pallas_src>

<mosaic_0001>
module attributes {stable_mosaic.version = 11 : i64} {
  func.func @_add_kernel(%arg0: i32, %arg1: memref<8x64xf32, #tpu.memory_space<vmem>>, %arg2: memref<8x64xf32, #tpu.memory_space<vmem>>, %arg3: memref<8x64xf32, #tpu.memory_space<vmem>>) attributes {dimension_semantics = [#tpu.dimension_semantics<parallel>], iteration_bounds = array<i64: 1>, scalar_prefetch = 0 : i64, scratch_operands = 0 : i64, tpu.core_type = #tpu.core_type<tc>, window_params = [{transform_indices = @transform_0, window_bounds = array<i64: 8, 64>}, {transform_indices = @transform_1, window_bounds = array<i64: 8, 64>}, {transform_indices = @transform_2, window_bounds = array<i64: 8, 64>}]} {
    %c0 = arith.constant 0 : index
    %c0_0 = arith.constant 0 : index
    %0 = vector.load %arg1[%c0, %c0_0] : memref<8x64xf32, #tpu.memory_space<vmem>>, vector<8x64xf32>
    %c0_1 = arith.constant 0 : index
    %c0_2 = arith.constant 0 : index
    %1 = vector.load %arg2[%c0_1, %c0_2] : memref<8x64xf32, #tpu.memory_space<vmem>>, vector<8x64xf32>
    %2 = arith.addf %0, %1 : vector<8x64xf32>
    %c0_3 = arith.constant 0 : index
    %c0_4 = arith.constant 0 : index
    %3 = vector.load %arg3[%c0_3, %c0_4] : memref<8x64xf32, #tpu.memory_space<vmem>>, vector<8x64xf32>
    tpu.vector_store %arg3[%c0_3, %c0_4], %2 {strides = array<i32>} : memref<8x64xf32, #tpu.memory_space<vmem>>, vector<8x64xf32>,
    return
  }
  func.func @transform_0(%arg0: i32) -> (i32, i32) {
    %c0_i32 = arith.constant 0 : i32
    %c0_i32_0 = arith.constant 0 : i32
    return %arg0, %c0_i32 : i32, i32
  }
  func.func @transform_1(%arg0: i32) -> (i32, i32) {
    %c0_i32 = arith.constant 0 : i32
    %c0_i32_0 = arith.constant 0 : i32
    return %arg0, %c0_i32 : i32, i32
  }
  func.func @transform_2(%arg0: i32) -> (i32, i32) {
    %c0_i32 = arith.constant 0 : i32
    %c0_i32_0 = arith.constant 0 : i32
    return %arg0, %c0_i32 : i32, i32
  }
}

</mosaic_0001>

<bundles_post_ra>
// kernel: tile.7
= control target key start
LH: loop header
LB: loop body
LE: loop exit
PB: predicated region body
PF: predicated region fallthrough
CT: control target
= control target key end

     0   :  { %vm36_vm0 = vcmask 1047556   ;;  %vm38_vm1 = vcmask 261120   ;;  %vm48_vm2 = vcmask 523520   ;;  %s99_s0 = inlined_call_operand.vmem [shape: f32[8,2,32], index: 0, kind: input, shape index: {}]   ;;  %s100_s1 = inlined_call_operand.vmem [shape: f32[8,64], index: 1, kind: output, shape index: {}]  }
   0x1   :  { %v50_v0 = vld [vmem:[%s99_s0 + $0xe] sm:$0x3]  ;;  %v51_v1 = vld [vmem:[%s99_s0 + $0xc] sm:$0x3]  ;;  %v52_v2 = vld [vmem:[%s99_s0 + $0xa] sm:$0x3] }
   0x2   :  { %7 = vst [vmem:[#allocation0 + $0x38] sm:$0x3] %v50_v0  ;;  %v53_v3 = vld [vmem:[%s99_s0 + $0x8] sm:$0x3]  ;;  %v54_v4 = vld [vmem:[%s99_s0 + $0x6] sm:$0x3] }
   0x3   :  { %11 = vst [vmem:[#allocation0 + $0x30] sm:$0x3] %v51_v1  ;;  %v55_v5 = vld [vmem:[%s99_s0 + $0x4] sm:$0x3]  ;;  %v56_v6 = vld [vmem:[%s99_s0 + $0x2] sm:$0x3] }
   0x4   :  { %15 = vst [vmem:[#allocation0 + $0x28] sm:$0x3] %v52_v2  ;;  %v32_v7 = vld [vmem:[%s99_s0] sm:$0x3]  ;;  %s58_s0 = smov 32  }
   0x5   :  { %19 = vst [vmem:[#allocation0 + $0x20] sm:$0x3] %v53_v3 }
   0x6   :  { %23 = vst [vmem:[#allocation0 + $0x18] sm:$0x3] %v54_v4 }
   0x7   :  { %27 = vst [vmem:[#allocation0 + $0x10] sm:$0x3] %v55_v5 }
   0x8   :  { %31 = vst [vmem:[#allocation0 + $0x8] sm:$0x3] %v56_v6 }
   0x9   :  { %33 = vst [vmem:[#allocation0] sm:$0x3] %v32_v7 }
   0xc   :  { %v35_v8 = vld [vmem:[#allocation0] ss:$8 sm:$0xf0]   ;;  %v43_v9 = vld [vmem:[#allocation0 + $0x1] ss:$8 sm:$0xf0]  }
  0x10   :  { %v34_v10 = vld [vmem:[#allocation0] ss:$8 sm:$0xf]   ;;  %v41_v11 = vld [vmem:[#allocation0 + $0x1] ss:$8 sm:$0xf]  }
  0x11   :  { %v37_v12 = vsel %vm36_vm0, %v35_v8, %v34_v10  ;;  %v45_v13 = vsel %vm36_vm0, %v43_v9, %v41_v11 }
  0x12   :  { %46 = vrot.lane.b32.xlu0 %v45_v13, %s58_s0  ;;  %39 = vst.msk [vmem:[%s100_s1] sm:$0xff] %vm38_vm1, %v37_v12  }
  0x84   :  { %v47_v14 = vpop.permute.xlu0 %46  }
  0x85   :  { %49 = vst.msk [vmem:[%s100_s1] sm:$0xff] %vm48_vm2, %v47_v14  }

// kernel: positional_encoding_forward.1
= control target key start
LH: loop header
LB: loop body
LE: loop exit
PB: predicated region body
PF: predicated region fallthrough
CT: control target
= control target key end

     0   :  { %vm14_vm0 = vcmask 523264   ;;  %s44_s0 = inlined_call_operand.vmem [shape: f32[8,64], index: 0, kind: input, shape index: {}]   ;;  %s45_s1 = inlined_call_operand.vmem [shape: f32[8,64], index: 1, kind: input, shape index: {}]   ;;  %s46_s2 = inlined_call_operand.vmem [shape: f32[8,64], index: 2, kind: output, shape index: {}]  }
   0x1   :  { %v11_v0 = vld [vmem:[%s44_s0] sm:$0xff] }
   0x2   :  { %v12_v1 = vld [vmem:[%s45_s1] sm:$0xff] }
   0x3   :  { %v13_v2 = vadd.f32 %v12_v1, %v11_v0 }
   0x5   :  { %15 = vst.msk [vmem:[%s46_s2] sm:$0xff] %vm14_vm0, %v13_v2 }

</bundles_post_ra>
